<compile_context>
chip_gen: v7x
topology: tpu7x:2x2x1
jax: 0.10.0
libtpu: 0.0.40
codegen_flags: <defaults>
</compile_context>

<pallas_src>
import functools

import numpy as np
import jax
import jax.numpy as jnp
from jax import lax
from jax.experimental import pallas as pl
from jax.experimental.pallas import tpu as pltpu


# ----------------------------- fused kernel -------------------------------- #

def _fused_attention_kernel(x_ref, wqkv_ref, wproj_ref, bproj_ref, o_ref,
                            ctx_ref, *, num_heads, scale, mxu_dtype):
    """One batch element per grid step.

    x_ref    : (1, N, C)  mxu_dtype  -- input tokens for this batch element
    wqkv_ref : (C, 3C)    mxu_dtype  -- resident in VMEM (constant index_map)
    wproj_ref: (C, C)     mxu_dtype  -- resident in VMEM
    bproj_ref: (1, C)     f32
    o_ref    : (1, N, C)  f32
    ctx_ref  : (N, C)     f32 VMEM scratch (attention context, lane-dense)
    """
    N = x_ref.shape[1]
    C = x_ref.shape[2]
    H = num_heads
    D = C // H

    x = x_ref[0]                                                     # (N, C)

    # qkv projection: one lane-dense MXU matmul with f32 accumulation.
    qkv = jnp.dot(x, wqkv_ref[...],
                  preferred_element_type=jnp.float32)                # (N, 3C)

    # Fold the softmax scale into q; slice q/k/v column ranges (no transpose).
    q = (qkv[:, :C] * scale).astype(mxu_dtype)                       # (N, C)
    k = qkv[:, C:2 * C].astype(mxu_dtype)                            # (N, C)
    v = qkv[:, 2 * C:].astype(mxu_dtype)                             # (N, C)

    # Per-head attention.  H is small and static -> fully unrolled; the context
    # is written head-by-head into the lane-dense (N, C) scratch.
    for h in range(H):
        qh = q[:, h * D:(h + 1) * D]                                 # (N, D)
        kh = k[:, h * D:(h + 1) * D]                                 # (N, D)
        vh = v[:, h * D:(h + 1) * D]                                 # (N, D)

        # q @ k^T contracting the last dim of both operands (no k.T materialized).
        s = lax.dot_general(qh, kh, (((1,), (1,)), ((), ())),
                            preferred_element_type=jnp.float32)      # (N, N) f32

        # Numerically-stable softmax, all in f32 (VPU/EUP).
        m = jnp.max(s, axis=-1, keepdims=True)
        p = jnp.exp(s - m)
        p = p * pl.reciprocal(jnp.sum(p, axis=-1, keepdims=True), approx=True)

        ctx_ref[:, h * D:(h + 1) * D] = jnp.dot(
            p.astype(mxu_dtype), vh, preferred_element_type=jnp.float32)

    # Output projection + bias, written back as a lane-dense (N, C) tile.
    y = jnp.dot(ctx_ref[...].astype(mxu_dtype), wproj_ref[...],
                preferred_element_type=jnp.float32) + bproj_ref[...]
    o_ref[0] = y


# ------------------------------- wrapper ------------------------------------ #

def attention_forward(x, w_qkv, w_proj, b_proj, num_heads,
                      *, mxu_dtype=jnp.bfloat16):
    """Pallas equivalent of Attention.forward (eval mode, dropout p=0).

    x      : (B, N, C) float32
    w_qkv  : (3C, C)   nn.Linear weight layout (out_features, in_features)
    w_proj : (C, C)
    b_proj : (C,)
    """
    B, N, C = x.shape
    H = num_heads
    assert C % H == 0, "dim should be divisible by num_heads"
    D = C // H
    scale = D ** (-0.5)

    # bf16 MXU operands (f32 accumulation inside the kernel); one-time weight
    # transpose so the kernel does plain (M,K)@(K,N) matmuls.
    x_in = x.astype(mxu_dtype)                       # (B, N, C)
    wqkv_in = w_qkv.T.astype(mxu_dtype)              # (C, 3C)
    wproj_in = w_proj.T.astype(mxu_dtype)            # (C, C)
    bproj_in = b_proj.reshape(1, C).astype(jnp.float32)

    # Explicit VMEM budget (double-buffered tiles + resident weights + scratch +
    # headroom) so the kernel behaves on v7x's 64 MiB VMEM as well as v5e/v6e.
    esz = np.dtype(mxu_dtype).itemsize
    tile_bytes = (
        2 * N * C * esz              # x tile (double-buffered)
        + 2 * C * 3 * C * esz        # w_qkv
        + 2 * C * C * esz            # w_proj
        + 2 * C * 4                  # bias
        + 2 * N * C * 4              # output tile (double-buffered)
        + N * C * 4                  # ctx scratch
        + N * (3 * C + N) * 4        # qkv + score intermediates
    )
    vmem_limit = int(min(max(2 * tile_bytes, 32 * 1024 * 1024),
                         64 * 1024 * 1024))

    kernel = functools.partial(_fused_attention_kernel,
                               num_heads=H, scale=scale, mxu_dtype=mxu_dtype)

    return pl.pallas_call(
        kernel,
        out_shape=jax.ShapeDtypeStruct((B, N, C), jnp.float32),
        grid=(B,),
        in_specs=[
            pl.BlockSpec((1, N, C), lambda b: (b, 0, 0)),      # x, per batch
            pl.BlockSpec((C, 3 * C), lambda b: (0, 0)),        # w_qkv, resident
            pl.BlockSpec((C, C), lambda b: (0, 0)),            # w_proj, resident
            pl.BlockSpec((1, C), lambda b: (0, 0)),            # bias, resident
        ],
        out_specs=pl.BlockSpec((1, N, C), lambda b: (b, 0, 0)),
        scratch_shapes=[pltpu.VMEM((N, C), jnp.float32)],
        compiler_params=pltpu.CompilerParams(
            dimension_semantics=("parallel",),
            vmem_limit_bytes=vmem_limit),
    )(x_in, wqkv_in, wproj_in, bproj_in)


# -------------------------- pure-JAX reference ------------------------------ #

def attention_ref(x, w_qkv, w_proj, b_proj, num_heads):
    B, N, C = x.shape
    H = num_heads
    D = C // H
    scale = D ** (-0.5)
    qkv = (x.reshape(B * N, C) @ w_qkv.T).reshape(B, N, 3, H, D)
    qkv = qkv.transpose(2, 0, 3, 1, 4)
    q, k, v = qkv[0], qkv[1], qkv[2]
    attn = jnp.einsum("bhnd,bhmd->bhnm", q, k) * scale
    attn = jax.nn.softmax(attn, axis=-1)
    o = jnp.einsum("bhnm,bhmd->bhnd", attn, v)
    o = o.transpose(0, 2, 1, 3).reshape(B, N, C)
    return o @ w_proj.T + b_proj


# --------------------------------- main ------------------------------------- #

if __name__ == "__main__":
    B, N, C = 2, 8, 32
    num_heads = 4   # head_dim = 8

    key = jax.random.PRNGKey(0)
    k_x, k_qkv, k_proj, k_bias = jax.random.split(key, 4)

    x = jax.random.normal(k_x, (B, N, C), dtype=jnp.float32)
    # nn.Linear weight layout: (out_features, in_features)
    w_qkv = jax.random.normal(k_qkv, (3 * C, C), dtype=jnp.float32) * 0.05
    w_proj = jax.random.normal(k_proj, (C, C), dtype=jnp.float32) * 0.05
    b_proj = jax.random.normal(k_bias, (C,), dtype=jnp.float32) * 0.05

    out = attention_forward(x, w_qkv, w_proj, b_proj, num_heads)
    out = jax.block_until_ready(out)

    ref = attention_ref(x, w_qkv, w_proj, b_proj, num_heads)
    assert out.shape == (B, N, C)
    # bf16 MXU operands + approx reciprocal -> slightly looser tolerance vs f32 ref.
    assert jnp.allclose(out, ref, atol=2e-2, rtol=2e-2), "mismatch vs reference"

    print("KERNEL_OK")
</pallas_src>

<mosaic_0001>
module attributes {stable_mosaic.version = 11 : i64} {
  func.func @_fused_attention_kernel(%arg0: i32, %arg1: memref<1x8x32xbf16, #tpu.memory_space<vmem>>, %arg2: memref<32x96xbf16, #tpu.memory_space<vmem>>, %arg3: memref<32x32xbf16, #tpu.memory_space<vmem>>, %arg4: memref<1x32xf32, #tpu.memory_space<vmem>>, %arg5: memref<1x8x32xf32, #tpu.memory_space<vmem>>, %arg6: memref<8x32xf32, #tpu.memory_space<vmem>>) attributes {dimension_semantics = [#tpu.dimension_semantics<parallel>], iteration_bounds = array<i64: 2>, scalar_prefetch = 0 : i64, scratch_operands = 1 : i64, tpu.core_type = #tpu.core_type<tc>, window_params = [{transform_indices = @transform_0, window_bounds = array<i64: 1, 8, 32>}, {pipeline_mode = #tpu.pipeline_mode<synchronous>, transform_indices = @transform_1, window_bounds = array<i64: 32, 96>}, {pipeline_mode = #tpu.pipeline_mode<synchronous>, transform_indices = @transform_2, window_bounds = array<i64: 32, 32>}, {pipeline_mode = #tpu.pipeline_mode<synchronous>, transform_indices = @transform_3, window_bounds = array<i64: 1, 32>}, {transform_indices = @transform_4, window_bounds = array<i64: 1, 8, 32>}]} {
    %c0 = arith.constant 0 : index
    %c0_0 = arith.constant 0 : index
    %c0_1 = arith.constant 0 : index
    %0 = vector.load %arg1[%c0, %c0_0, %c0_1] : memref<1x8x32xbf16, #tpu.memory_space<vmem>>, vector<1x8x32xbf16>
    %1 = vector.shape_cast %0 : vector<1x8x32xbf16> to vector<8x32xbf16>
    %c0_2 = arith.constant 0 : index
    %c0_3 = arith.constant 0 : index
    %2 = vector.load %arg2[%c0_2, %c0_3] : memref<32x96xbf16, #tpu.memory_space<vmem>>, vector<32x96xbf16>
    %cst = arith.constant dense<0.000000e+00> : vector<8x96xf32>
    %3 = tpu.matmul %1, %2, %cst {dimension_numbers = #tpu.dot_dimension_numbers<[1], [0], [0], [1], [0, 0, 1, 1], [], []>} : vector<8x32xbf16>, vector<32x96xbf16>, vector<8x96xf32> -> vector<8x96xf32>
    %4 = vector.extract_strided_slice %3 {offsets = [0, 0], sizes = [8, 32], strides = [1, 1]} : vector<8x96xf32> to vector<8x32xf32>
    %cst_4 = arith.constant 0.353553385 : f32
    %5 = vector.broadcast %cst_4 : f32 to vector<8x32xf32>
    %6 = arith.mulf %4, %5 : vector<8x32xf32>
    %7 = arith.truncf %6 : vector<8x32xf32> to vector<8x32xbf16>
    %8 = vector.extract_strided_slice %3 {offsets = [0, 32], sizes = [8, 32], strides = [1, 1]} : vector<8x96xf32> to vector<8x32xf32>
    %9 = arith.truncf %8 : vector<8x32xf32> to vector<8x32xbf16>
    %10 = vector.extract_strided_slice %3 {offsets = [0, 64], sizes = [8, 32], strides = [1, 1]} : vector<8x96xf32> to vector<8x32xf32>
    %11 = arith.truncf %10 : vector<8x32xf32> to vector<8x32xbf16>
    %12 = vector.extract_strided_slice %7 {offsets = [0, 0], sizes = [8, 8], strides = [1, 1]} : vector<8x32xbf16> to vector<8x8xbf16>
    %13 = vector.extract_strided_slice %9 {offsets = [0, 0], sizes = [8, 8], strides = [1, 1]} : vector<8x32xbf16> to vector<8x8xbf16>
    %14 = vector.extract_strided_slice %11 {offsets = [0, 0], sizes = [8, 8], strides = [1, 1]} : vector<8x32xbf16> to vector<8x8xbf16>
    %cst_5 = arith.constant dense<0.000000e+00> : vector<8x8xf32>
    %15 = tpu.matmul %12, %13, %cst_5 {dimension_numbers = #tpu.dot_dimension_numbers<[1], [1], [0], [0], [0, 0, 1, 0], [], []>} : vector<8x8xbf16>, vector<8x8xbf16>, vector<8x8xf32> -> vector<8x8xf32>
    %cst_6 = arith.constant dense<0xFF800000> : vector<8xf32>
    %16 = vector.multi_reduction <maximumf>, %15, %cst_6 [1] : vector<8x8xf32> to vector<8xf32>
    %17 = vector.shape_cast %16 : vector<8xf32> to vector<8x1xf32>
    %18 = vector.broadcast %17 : vector<8x1xf32> to vector<8x8xf32>
    %19 = arith.subf %15, %18 : vector<8x8xf32>
    %20 = math.exp %19 : vector<8x8xf32>
    %cst_7 = arith.constant dense<0.000000e+00> : vector<8xf32>
    %21 = vector.multi_reduction <add>, %20, %cst_7 [1] : vector<8x8xf32> to vector<8xf32>
    %22 = vector.shape_cast %21 : vector<8xf32> to vector<8x1xf32>
    %23 = tpu.reciprocal %22 {approx = true} : vector<8x1xf32> -> vector<8x1xf32>
    %24 = vector.broadcast %23 : vector<8x1xf32> to vector<8x8xf32>
    %25 = arith.mulf %20, %24 : vector<8x8xf32>
    %26 = arith.truncf %25 : vector<8x8xf32> to vector<8x8xbf16>
    %cst_8 = arith.constant dense<0.000000e+00> : vector<8x8xf32>
    %27 = tpu.matmul %26, %14, %cst_8 {dimension_numbers = #tpu.dot_dimension_numbers<[1], [0], [0], [1], [0, 0, 1, 1], [], []>} : vector<8x8xbf16>, vector<8x8xbf16>, vector<8x8xf32> -> vector<8x8xf32>
    %c0_9 = arith.constant 0 : index
    %c0_10 = arith.constant 0 : index
    %28 = vector.load %arg6[%c0_9, %c0_10] : memref<8x32xf32, #tpu.memory_space<vmem>>, vector<8x8xf32>
    tpu.vector_store %arg6[%c0_9, %c0_10], %27 {strides = array<i32>} : memref<8x32xf32, #tpu.memory_space<vmem>>, vector<8x8xf32>,
    %29 = vector.extract_strided_slice %7 {offsets = [0, 8], sizes = [8, 8], strides = [1, 1]} : vector<8x32xbf16> to vector<8x8xbf16>
    %30 = vector.extract_strided_slice %9 {offsets = [0, 8], sizes = [8, 8], strides = [1, 1]} : vector<8x32xbf16> to vector<8x8xbf16>
    %31 = vector.extract_strided_slice %11 {offsets = [0, 8], sizes = [8, 8], strides = [1, 1]} : vector<8x32xbf16> to vector<8x8xbf16>
    %cst_11 = arith.constant dense<0.000000e+00> : vector<8x8xf32>
    %32 = tpu.matmul %29, %30, %cst_11 {dimension_numbers = #tpu.dot_dimension_numbers<[1], [1], [0], [0], [0, 0, 1, 0], [], []>} : vector<8x8xbf16>, vector<8x8xbf16>, vector<8x8xf32> -> vector<8x8xf32>
    %cst_12 = arith.constant dense<0xFF800000> : vector<8xf32>
    %33 = vector.multi_reduction <maximumf>, %32, %cst_12 [1] : vector<8x8xf32> to vector<8xf32>
    %34 = vector.shape_cast %33 : vector<8xf32> to vector<8x1xf32>
    %35 = vector.broadcast %34 : vector<8x1xf32> to vector<8x8xf32>
    %36 = arith.subf %32, %35 : vector<8x8xf32>
    %37 = math.exp %36 : vector<8x8xf32>
    %cst_13 = arith.constant dense<0.000000e+00> : vector<8xf32>
    %38 = vector.multi_reduction <add>, %37, %cst_13 [1] : vector<8x8xf32> to vector<8xf32>
    %39 = vector.shape_cast %38 : vector<8xf32> to vector<8x1xf32>
    %40 = tpu.reciprocal %39 {approx = true} : vector<8x1xf32> -> vector<8x1xf32>
    %41 = vector.broadcast %40 : vector<8x1xf32> to vector<8x8xf32>
    %42 = arith.mulf %37, %41 : vector<8x8xf32>
    %43 = arith.truncf %42 : vector<8x8xf32> to vector<8x8xbf16>
    %cst_14 = arith.constant dense<0.000000e+00> : vector<8x8xf32>
    %44 = tpu.matmul %43, %31, %cst_14 {dimension_numbers = #tpu.dot_dimension_numbers<[1], [0], [0], [1], [0, 0, 1, 1], [], []>} : vector<8x8xbf16>, vector<8x8xbf16>, vector<8x8xf32> -> vector<8x8xf32>
    %c0_15 = arith.constant 0 : index
    %c8 = arith.constant 8 : index
    %45 = vector.load %arg6[%c0_15, %c8] : memref<8x32xf32, #tpu.memory_space<vmem>>, vector<8x8xf32>
    tpu.vector_store %arg6[%c0_15, %c8], %44 {strides = array<i32>} : memref<8x32xf32, #tpu.memory_space<vmem>>, vector<8x8xf32>,
    %46 = vector.extract_strided_slice %7 {offsets = [0, 16], sizes = [8, 8], strides = [1, 1]} : vector<8x32xbf16> to vector<8x8xbf16>
    %47 = vector.extract_strided_slice %9 {offsets = [0, 16], sizes = [8, 8], strides = [1, 1]} : vector<8x32xbf16> to vector<8x8xbf16>
    %48 = vector.extract_strided_slice %11 {offsets = [0, 16], sizes = [8, 8], strides = [1, 1]} : vector<8x32xbf16> to vector<8x8xbf16>
    %cst_16 = arith.constant dense<0.000000e+00> : vector<8x8xf32>
    %49 = tpu.matmul %46, %47, %cst_16 {dimension_numbers = #tpu.dot_dimension_numbers<[1], [1], [0], [0], [0, 0, 1, 0], [], []>} : vector<8x8xbf16>, vector<8x8xbf16>, vector<8x8xf32> -> vector<8x8xf32>
    %cst_17 = arith.constant dense<0xFF800000> : vector<8xf32>
    %50 = vector.multi_reduction <maximumf>, %49, %cst_17 [1] : vector<8x8xf32> to vector<8xf32>
    %51 = vector.shape_cast %50 : vector<8xf32> to vector<8x1xf32>
    %52 = vector.broadcast %51 : vector<8x1xf32> to vector<8x8xf32>
    %53 = arith.subf %49, %52 : vector<8x8xf32>
    %54 = math.exp %53 : vector<8x8xf32>
    %cst_18 = arith.constant dense<0.000000e+00> : vector<8xf32>
    %55 = vector.multi_reduction <add>, %54, %cst_18 [1] : vector<8x8xf32> to vector<8xf32>
    %56 = vector.shape_cast %55 : vector<8xf32> to vector<8x1xf32>
    %57 = tpu.reciprocal %56 {approx = true} : vector<8x1xf32> -> vector<8x1xf32>
    %58 = vector.broadcast %57 : vector<8x1xf32> to vector<8x8xf32>
    %59 = arith.mulf %54, %58 : vector<8x8xf32>
    %60 = arith.truncf %59 : vector<8x8xf32> to vector<8x8xbf16>
    %cst_19 = arith.constant dense<0.000000e+00> : vector<8x8xf32>
    %61 = tpu.matmul %60, %48, %cst_19 {dimension_numbers = #tpu.dot_dimension_numbers<[1], [0], [0], [1], [0, 0, 1, 1], [], []>} : vector<8x8xbf16>, vector<8x8xbf16>, vector<8x8xf32> -> vector<8x8xf32>
    %c0_20 = arith.constant 0 : index
    %c16 = arith.constant 16 : index
    %62 = vector.load %arg6[%c0_20, %c16] : memref<8x32xf32, #tpu.memory_space<vmem>>, vector<8x8xf32>
    tpu.vector_store %arg6[%c0_20, %c16], %61 {strides = array<i32>} : memref<8x32xf32, #tpu.memory_space<vmem>>, vector<8x8xf32>,
    %63 = vector.extract_strided_slice %7 {offsets = [0, 24], sizes = [8, 8], strides = [1, 1]} : vector<8x32xbf16> to vector<8x8xbf16>
    %64 = vector.extract_strided_slice %9 {offsets = [0, 24], sizes = [8, 8], strides = [1, 1]} : vector<8x32xbf16> to vector<8x8xbf16>
    %65 = vector.extract_strided_slice %11 {offsets = [0, 24], sizes = [8, 8], strides = [1, 1]} : vector<8x32xbf16> to vector<8x8xbf16>
    %cst_21 = arith.constant dense<0.000000e+00> : vector<8x8xf32>
    %66 = tpu.matmul %63, %64, %cst_21 {dimension_numbers = #tpu.dot_dimension_numbers<[1], [1], [0], [0], [0, 0, 1, 0], [], []>} : vector<8x8xbf16>, vector<8x8xbf16>, vector<8x8xf32> -> vector<8x8xf32>
    %cst_22 = arith.constant dense<0xFF800000> : vector<8xf32>
    %67 = vector.multi_reduction <maximumf>, %66, %cst_22 [1] : vector<8x8xf32> to vector<8xf32>
    %68 = vector.shape_cast %67 : vector<8xf32> to vector<8x1xf32>
    %69 = vector.broadcast %68 : vector<8x1xf32> to vector<8x8xf32>
    %70 = arith.subf %66, %69 : vector<8x8xf32>
    %71 = math.exp %70 : vector<8x8xf32>
    %cst_23 = arith.constant dense<0.000000e+00> : vector<8xf32>
    %72 = vector.multi_reduction <add>, %71, %cst_23 [1] : vector<8x8xf32> to vector<8xf32>
    %73 = vector.shape_cast %72 : vector<8xf32> to vector<8x1xf32>
    %74 = tpu.reciprocal %73 {approx = true} : vector<8x1xf32> -> vector<8x1xf32>
    %75 = vector.broadcast %74 : vector<8x1xf32> to vector<8x8xf32>
    %76 = arith.mulf %71, %75 : vector<8x8xf32>
    %77 = arith.truncf %76 : vector<8x8xf32> to vector<8x8xbf16>
    %cst_24 = arith.constant dense<0.000000e+00> : vector<8x8xf32>
    %78 = tpu.matmul %77, %65, %cst_24 {dimension_numbers = #tpu.dot_dimension_numbers<[1], [0], [0], [1], [0, 0, 1, 1], [], []>} : vector<8x8xbf16>, vector<8x8xbf16>, vector<8x8xf32> -> vector<8x8xf32>
    %c0_25 = arith.constant 0 : index
    %c24 = arith.constant 24 : index
    %79 = vector.load %arg6[%c0_25, %c24] : memref<8x32xf32, #tpu.memory_space<vmem>>, vector<8x8xf32>
    tpu.vector_store %arg6[%c0_25, %c24], %78 {strides = array<i32>} : memref<8x32xf32, #tpu.memory_space<vmem>>, vector<8x8xf32>,
    %c0_26 = arith.constant 0 : index
    %c0_27 = arith.constant 0 : index
    %80 = vector.load %arg6[%c0_26, %c0_27] : memref<8x32xf32, #tpu.memory_space<vmem>>, vector<8x32xf32>
    %81 = arith.truncf %80 : vector<8x32xf32> to vector<8x32xbf16>
    %c0_28 = arith.constant 0 : index
    %c0_29 = arith.constant 0 : index
    %82 = vector.load %arg3[%c0_28, %c0_29] : memref<32x32xbf16, #tpu.memory_space<vmem>>, vector<32x32xbf16>
    %cst_30 = arith.constant dense<0.000000e+00> : vector<8x32xf32>
    %83 = tpu.matmul %81, %82, %cst_30 {dimension_numbers = #tpu.dot_dimension_numbers<[1], [0], [0], [1], [0, 0, 1, 1], [], []>} : vector<8x32xbf16>, vector<32x32xbf16>, vector<8x32xf32> -> vector<8x32xf32>
    %c0_31 = arith.constant 0 : index
    %c0_32 = arith.constant 0 : index
    %84 = vector.load %arg4[%c0_31, %c0_32] : memref<1x32xf32, #tpu.memory_space<vmem>>, vector<1x32xf32>
    %85 = vector.broadcast %84 : vector<1x32xf32> to vector<8x32xf32>
    %86 = arith.addf %83, %85 : vector<8x32xf32>
    %c0_33 = arith.constant 0 : index
    %c0_34 = arith.constant 0 : index
    %c0_35 = arith.constant 0 : index
    %87 = vector.load %arg5[%c0_33, %c0_34, %c0_35] : memref<1x8x32xf32, #tpu.memory_space<vmem>>, vector<1x8x32xf32>
    %88 = vector.shape_cast %87 : vector<1x8x32xf32> to vector<8x32xf32>
    %89 = vector.shape_cast %86 : vector<8x32xf32> to vector<1x8x32xf32>
    tpu.vector_store %arg5[%c0_33, %c0_34, %c0_35], %89 {strides = array<i32>} : memref<1x8x32xf32, #tpu.memory_space<vmem>>, vector<1x8x32xf32>,
    return
  }
  func.func @transform_0(%arg0: i32) -> (i32, i32, i32) {
    %c0_i32 = arith.constant 0 : i32
    %c0_i32_0 = arith.constant 0 : i32
    %c0_i32_1 = arith.constant 0 : i32
    return %arg0, %c0_i32, %c0_i32_0 : i32, i32, i32
  }
  func.func @transform_1(%arg0: i32) -> (i32, i32) {
    %c0_i32 = arith.constant 0 : i32
    %c0_i32_0 = arith.constant 0 : i32
    %c0_i32_1 = arith.constant 0 : i32
    return %c0_i32, %c0_i32_0 : i32, i32
  }
  func.func @transform_2(%arg0: i32) -> (i32, i32) {
    %c0_i32 = arith.constant 0 : i32
    %c0_i32_0 = arith.constant 0 : i32
    %c0_i32_1 = arith.constant 0 : i32
    return %c0_i32, %c0_i32_0 : i32, i32
  }
  func.func @transform_3(%arg0: i32) -> (i32, i32) {
    %c0_i32 = arith.constant 0 : i32
    %c0_i32_0 = arith.constant 0 : i32
    %c0_i32_1 = arith.constant 0 : i32
    return %c0_i32, %c0_i32_0 : i32, i32
  }
  func.func @transform_4(%arg0: i32) -> (i32, i32, i32) {
    %c0_i32 = arith.constant 0 : i32
    %c0_i32_0 = arith.constant 0 : i32
    %c0_i32_1 = arith.constant 0 : i32
    return %arg0, %c0_i32, %c0_i32_0 : i32, i32, i32
  }
}

</mosaic_0001>

<bundles_post_ra>
// kernel: tpu_custom_call.1
= control target key start
LH: loop header
LB: loop body
LE: loop exit
PB: predicated region body
PF: predicated region fallthrough
CT: control target
= control target key end

     0   :  { %9 = vsyncpa [#allocation4], 0  ;;  %s1670_s0 = inlined_call_operand.hbm [shape: bf16[2,8,32], index: 0, kind: input, shape index: {}]   ;;  %s1671_s1 = inlined_call_operand.hbm [shape: bf16[32,96], index: 1, kind: input, shape index: {}]   ;;  %s1672_s2 = inlined_call_operand.hbm [shape: bf16[32,32], index: 2, kind: input, shape index: {}]   ;;  %s1673_s3 = inlined_call_operand.vmem [shape: f32[1,32], index: 3, kind: input, shape index: {}]   ;;  %s1674_s4 = inlined_call_operand.hbm [shape: f32[2,8,32], index: 4, kind: output, shape index: {}]  }
   0x1   :  { %11 = vsyncpa [#allocation4 + $0x1], 0 }
   0x2   :  { %12 = vsyncpa [#allocation7], 0 }
   0x3   :  { %13 = vsyncpa [#allocation5], 0 }
   0x4   :  { %15 = vsyncpa [#allocation5 + $0x1], 0  ;;  %s1367_s15 = smov 0   ;;  %s1369_s16 = smov 0  }
   0x5   :  { %s1371_s17 = smov 0   ;;  %s1373_s18 = smov 0  }
   0x6 LB: > { %s1388_s19 = sadd.s32 4294967295, %s1318_s18   ;;  %s940_s20 = sadd.s32 4294967294, %s1318_s18   ;;  %s1318_s18 = sphi %s1373_s18, %s1694_s18   ;;  %s1314_s17 = sphi %s1371_s17, %s1693_s17   ;;  %s1310_s16 = sphi %s1369_s16, %s1692_s16   ;;  %s1306_s15 = sphi %s1367_s15, %s1691_s15  }
   0x7   : > { %p41_p0 = scmp.ne.s32.totalorder %s1310_s16, %s1306_s15  ;;  %p1675_p1 = scmp.eq.s32.totalorder %s1388_s19, 0 }
   0x8   : > { %p134_p3 = scmp.eq.s32.totalorder %s940_s20, 1  ;;  %p941_p5 = scmp.ge.s32.totalorder %s1318_s18, 1 }
   0x9   : > { %p1397_p4 = por %p1675_p1, %p41_p0  ;;  %p141_p7 = scmp.lt.s32.totalorder %s1318_s18, 3 }
   0xa   : > { %p1402_p6 = por %p134_p3, %p41_p0  ;;  %s1320_s24 = smov [#allocation6]  }
   0xb   : > { %s1678_s21 = scalar_select %p1397_p4, 1, 0 }
   0xc   : > { %s1679_s22 = scalar_select %p1402_p6, 1, 0 }
   0xd   : > { %p1407_p8 = pnand %p941_p5, %p141_p7  ;;  %s153_s25 = sshll.u32 %s1320_s24, 4  ;;  %s1411_s25 = int_to_ptr.vmem [resolvable:$true] %s153_s25 }
   0xe   : > { %s1321_s27 = smov [#allocation8]   ;;  %s1162_s5 = scalar_lea.hbm %s1671_s1, 256 }
   0xf   : > { %p1069_p9 = pneg %p1407_p8  ;;  %s166_s28 = sshll.u32 %s1321_s27, 4  ;;  %s1422_s28 = int_to_ptr.vmem [resolvable:$true] %s166_s28 }
  0x10   : > { %p1163_p12 = scmp.ne.s32.totalorder %s1671_s1, %s1162_s5  ;;  %p1169_p5 = scmp.lt.u32.totalorder %s1162_s5, %s1671_s1 }
  0x11   : > { %p1418_p11 = pnand %p1069_p9, %p1675_p1 }
  0x13   : > { %p1164_p13 = pneg %p1418_p11 }
  0x15   : > { %p1165_p0 = pnand %p1164_p13, %p1163_p12 }
  0x17   : > { %p1166_p3 = pneg %p1165_p0 }
  0x19   : > { %p1171_p7 = pnand %p1169_p5, %p1166_p3 }
  0x1b   : > { %1174 = shalt.err (!%p1171_p7)
}
  0x1c   : > { %s1175_s10 = scalar_lea.vmem %s1411_s25, 256  ;;  %p1183_p2 = scmp.lt.s32.totalorder %s1411_s25, %s1411_s25 }
  0x1d   : > { %p1176_p9 = scmp.ne.s32.totalorder %s1411_s25, %s1175_s10  ;;  %p1184_p12 = scmp.lt.s32.totalorder %s1175_s10, %s1175_s10 }
  0x1f   : > { %p1178_p10 = pnand %p1176_p9, %p1164_p13  ;;  %p1185_p0 = por %p1184_p12, %p1183_p2 }
  0x21   : > { %p1179_p1 = pneg %p1178_p10 }
  0x23   : > { %p1186_p6 = pnand %p1185_p0, %p1179_p1 }
  0x25   : > { %1189 = shalt.err (!%p1186_p6)
}
  0x26   : > { %s1322_s11 = smov 64   ;;  %s1323_s12 = smov 4  }
  0x27   : > { %1072 = dma.hbm_to_vmem [thread:$0]  (!%p1418_p11), %s1671_s1, 256, %s1411_s25, [#allocation7], %s1322_s11, %s1322_s11, %s1323_s12  }
  0x28   : > { %s1190_s27 = scalar_lea.hbm %s1672_s2, 256 }
  0x29   : > { %p1191_p2 = scmp.ne.s32.totalorder %s1672_s2, %s1190_s27  ;;  %p1197_p10 = scmp.lt.u32.totalorder %s1190_s27, %s1672_s2 }
  0x2b   : > { %p1193_p1 = pnand %p1191_p2, %p1164_p13 }
  0x2d   : > { %p1194_p6 = pneg %p1193_p1 }
  0x2f   : > { %p1199_p3 = pnand %p1197_p10, %p1194_p6 }
  0x31   : > { %1202 = shalt.err (!%p1199_p3)
}
  0x32   : > { %s1203_s25 = scalar_lea.vmem %s1422_s28, 256  ;;  %p1211_p12 = scmp.lt.s32.totalorder %s1422_s28, %s1422_s28 }
  0x33   : > { %p1204_p5 = scmp.ne.s32.totalorder %s1422_s28, %s1203_s25  ;;  %p1212_p0 = scmp.lt.s32.totalorder %s1203_s25, %s1203_s25 }
  0x35   : > { %p1206_p7 = pnand %p1204_p5, %p1164_p13  ;;  %p1213_p2 = por %p1212_p0, %p1211_p12 }
  0x37   : > { %p1207_p9 = pneg %p1206_p7 }
  0x39   : > { %p1214_p1 = pnand %p1213_p2, %p1207_p9 }
  0x3b   : > { %1217 = shalt.err (!%p1214_p1)
}
  0x3c   : > { %1075 = dma.hbm_to_vmem [thread:$0]  (!%p1418_p11), %s1672_s2, 256, %s1422_s28, [#allocation7], %s1322_s11, %s1322_s11, %s1323_s12  }
  0x3d   : > { %s1477_s9 = sadd.s32 1, %s1318_s18   ;;  %s28_s26 = sadd.s32 1, %s1314_s17 }
  0x3e   : > { %s25_s10 = ssub.s32 %s1318_s18, %s1477_s9  ;;  %p35_p13 = scmp.ne.s32.totalorder %s1314_s17, %s1310_s16 }
  0x3f   : > { %p26_p6 = scmp.eq.s32.totalorder %s25_s10, 0  ;;  %p36_p10 = scmp.eq.s32.totalorder %s1318_s18, 0 }
  0x40   : > { %p1682_p3 = scmp.eq.s32.totalorder %s1388_s19, 1  ;;  %p1086_p7 = scmp.lt.s32.totalorder %s1318_s18, 2 }
  0x41   : > { %s1493_s14 = scalar_select %p26_p6, %s1314_s17, %s28_s26  }
  0x42   : > { %p1487_p5 = por %p1682_p3, %p35_p13  ;;  %p37_p9 = por %p36_p10, %p35_p13 }
  0x43   : > { %s183_s20 = sand.u32 1, %s1314_s17   ;;  %s946_s28 = sshll.u32 %s1318_s18, 6 }
  0x44   : > { %s1683_s13 = scalar_select %p1487_p5, 1, 0 }
  0x45   : > { %s945_s24 = sshll.u32 %s183_s20, 2  ;;  %s1500_s27 = scalar_lea.hbm %s1670_s0, %s946_s28 }
  0x46   : > { %s187_s29 = scalar_lea.vmem [#allocation3], %s945_s24  ;;  %p1504_p11 = pnand %p1086_p7, %p37_p9 }
  0x47   : > { %s194_s30 = sshll.u32 %s187_s29, 4  ;;  %s184_s6 = scalar_lea.sflag [#allocation4], %s183_s20  ;;  %s1502_s30 = int_to_ptr.vmem [resolvable:$true] %s194_s30 }
  0x48   : > { %s1218_s25 = scalar_lea.hbm %s1500_s27, 64  ;;  %p1220_p0 = pneg %p1504_p11 }
  0x49   : > { %p1219_p12 = scmp.ne.s32.totalorder %s1500_s27, %s1218_s25  ;;  %s1223_s26 = scalar_lea.hbm %s1670_s0, 128 }
  0x4a   : > { %p1224_p13 = scmp.lt.u32.totalorder %s1500_s27, %s1670_s0  ;;  %p1225_p6 = scmp.lt.u32.totalorder %s1223_s26, %s1218_s25 }
  0x4b   : > { %p1221_p2 = pnand %p1220_p0, %p1219_p12  ;;  %p1227_p3 = scmp.lt.u32.totalorder %s1218_s25, %s1500_s27 }
  0x4c   : > { %p1226_p10 = por %p1225_p6, %p1224_p13 }
  0x4d   : > { %p1222_p1 = pneg %p1221_p2 }
  0x4e   : > { %p1228_p7 = por %p1227_p3, %p1226_p10 }
  0x50   : > { %p1229_p9 = pnand %p1228_p7, %p1222_p1 }
  0x52   : > { %1232 = shalt.err (!%p1229_p9)
}
  0x53   : > { %s1233_s20 = scalar_lea.vmem %s1502_s30, 64  ;;  %s1324_s28 = smov [#allocation3]  }
  0x54   : > { %p1234_p12 = scmp.ne.s32.totalorder %s1502_s30, %s1233_s20  ;;  %s1238_s11 = sshll.u32 %s1324_s28, 4  ;;  %s1239_s11 = int_to_ptr.vmem [resolvable:$false] %s1238_s11 }
  0x55   : > { %s1240_s12 = scalar_lea.vmem %s1239_s11, 128  ;;  %p1241_p4 = scmp.lt.s32.totalorder %s1502_s30, %s1239_s11 }
  0x56   : > { %p1236_p2 = pnand %p1234_p12, %p1220_p0  ;;  %p1242_p13 = scmp.lt.s32.totalorder %s1240_s12, %s1233_s20 }
  0x58   : > { %p1237_p5 = pneg %p1236_p2  ;;  %p1243_p6 = por %p1242_p13, %p1241_p4 }
  0x5a   : > { %p1244_p10 = pnand %p1243_p6, %p1237_p5 }
  0x5c   : > { %1247 = shalt.err (!%p1244_p10)
}
  0x5d   : > { %1079 = dma.hbm_to_vmem [thread:$0]  (!%p1504_p11), %s1500_s27, 64, %s1502_s30, %s184_s6  }
  0x5e   : > { %203 = sbr.rel (%p1407_p8) target bundleno = 1607 (0x647), region = 36  ;;  %s1536_s29 = sand.u32 (!%p1407_p8), 1, %s1310_s16  }
  0x5f   : > { %s948_s25 = sshll.u32 (!%p1407_p8), %s1536_s29, 2  ;;  %s206_s7 = scalar_lea.sflag (!%p1407_p8), [#allocation4], %s1536_s29 }
  0x60   : > { %s209_s8 = scalar_lea.vmem (!%p1407_p8), [#allocation3], %s948_s25  ;;  %p1685_p4 = scmp.ne.s32.totalorder (!%p1407_p8), %s1678_s21, 0 }
  0x65   : > { %1293 = dma.done.wait (%p1685_p4), %s206_s7, 64  }
  0x66   : > { %1295 = vsyncadd (%p1685_p4), %s206_s7, 4294967232  ;;  %p1686_p5 = scmp.eq.s32.totalorder %s1388_s19, 0 }
  0x68   : > { %1297 = dma.done.wait (%p1686_p5), [#allocation7], 512   ;;  %p1687_p11 = pmov %p1686_p5 }
  0x69   : > { %v1325_v0 = vmov 0.0   ;;  %vm1326_vm0 = vmmov 0   ;;  %v1142_v1 = vld [vmem:[#allocation6] sm:$0xff]   ;;  %v1143_v2 = vld [vmem:[#allocation6 + $0x8] sm:$0xff]   ;;  %v243_v3 = vld [vmem:[%s209_s8] sm:$0xf] }
  0x6a   : > { %1299 = vsyncadd (%p1687_p11), [#allocation7], 4294966784  ;;  %993 = vmatprep.subr.bf16.mxu0 %v1325_v0  ;;  %997 = vmatprep.mubr.msk.bf16.mxu0 %vm1326_vm0, %v1325_v0  ;;  %vm260_vm1 = vcmask 261120   ;;  %s1327_s21 = smov 96   ;;  %s1328_s23 = smov 120   ;;  %vm310_vm2 = vcmask 64512  }
  0x6b   : > { %1001 = vmatprep.subr.bf16.mxu1 %v1325_v0  ;;  %1003 = vmatprep.mubr.msk.bf16.mxu1 %vm1326_vm0, %v1325_v0  ;;  %s1329_s27 = smov 88   ;;  %s1330_s30 = smov 80   ;;  %vm374_vm3 = vcmask 1043456   ;;  %vm534_vm4 = vcmask 130112   ;;  %vm650_vm5 = vcmask 195712   ;;  %vm766_vm6 = vcmask 261312  }
  0x6c   : > { %994 = vmatpush3.bf16.msra.mxu0 %v1142_v1  ;;  %s1331_s5 = smov 112   ;;  %s1332_s6 = smov 72  }
  0x6d   : > { %995 = vmatprep.subr.bf16.mxu0 %v1325_v0  ;;  %s1333_s26 = smov 104   ;;  %s1334_s10 = smov 56  }
  0x6e   : > { %s1335_s24 = smov 64   ;;  %s1336_s20 = smov 40  }
  0x6f   : > { %s1337_s28 = smov 48   ;;  %s1338_s11 = smov 8  }
  0x70   : > { %996 = vmatpush3.bf16.msra.mxu0 %v1143_v2  ;;  %s1339_s12 = smov 16   ;;  %s1340_s25 = smov 24  }
  0x71   : > { %1007 = vmatprep.subr.bf16.mxu0 %v1325_v0  ;;  %s951_s7 = sshll.u32 %s1536_s29, 3  ;;  %p1688_p0 = scmp.ne.s32.totalorder %s1683_s13, 0 }
  0x73   : > { %998 = vmatmul.mubr.msk.bf16.vlgmr.msra.gmra.mrb[0].mxu0 %vm260_vm1, %v243_v3 }
  0x74   : > { %1009 = vmatprep.mubr.msk.bf16.mxu0 %vm1326_vm0, %v1325_v0 }
 0x146   : > { %v298_v4 = vpop.f32.mrb[0].mxu0 }
 0x147   : > { %v304_v5 = vmul.f32 0.35355338, %v298_v4  ;;  %v1559_v6 = vpack.c.bf16 %v298_v4, %v298_v4  ;;  %v999_v7 = vpop.f32.mrb[1].mxu0 }
 0x148   : > { %v301_v8 = vpop.f32.mrb[2].mxu0 }
 0x149   : > { %v305_v9 = vpack.c.bf16 %v304_v5, %v304_v5  ;;  %308 = vrot.lane.b32.xlu0 %v1559_v6, %s1327_s21  ;;  %v1000_v10 = vpop.f32.mrb[3].mxu0 }
 0x14b   : > { %420 = vrot.lane.b32.xlu1 %v305_v9, %s1328_s23  ;;  %s968_s23 = sshll.u32 %s1388_s19, 7  ;;  %s838_s19 = scalar_lea.sflag [#allocation5], %s1536_s29 }
 0x14d   : > { %422 = vrot.lane.b32.xlu0 %v1559_v6, %s1329_s27  ;;  %s241_s27 = scalar_lea.vmem [#allocation9], %s951_s7 }
 0x14f   : > { %538 = vrot.lane.b32.xlu1 %v1559_v6, %s1330_s30  ;;  %s851_s30 = sshll.u32 %s241_s27, 4  ;;  %s1627_s30 = int_to_ptr.vmem [resolvable:$true] %s851_s30 }
 0x151   : > { %536 = vrot.lane.b32.xlu0 %v305_v9, %s1331_s5 }
 0x153   : > { %654 = vrot.lane.b32.xlu1 %v1559_v6, %s1332_s6 }
 0x155   : > { %652 = vrot.lane.b32.xlu0 %v305_v9, %s1333_s26  ;;  %s1625_s26 = scalar_lea.hbm %s1674_s4, %s968_s23 }
 0x1bb   : > { %v309_v11 = vpop.permute.xlu0 %308 }
 0x1bc   : > { %v315_v12 = vsel %vm310_vm2, %v309_v11, 0 }
 0x1bd   : > { %1002 = vmatpush3.bf16.xpose.msra.mxu1 %v315_v12  ;;  %v421_v14 = vpop.permute.xlu1 %420 }
 0x1be   : > { %1013 = vmatprep.subr.bf16.mxu1 %v1325_v0 }
 0x1bf   : > { %v423_v13 = vpop.permute.xlu0 %422 }
 0x1c0   : > { %v428_v15 = vsel %vm310_vm2, %v423_v13, 0 }
 0x1c1   : > { %v539_v16 = vpop.permute.xlu1 %538 }
 0x1c2   : > { %v544_v17 = vsel %vm310_vm2, %v539_v16, 0 }
 0x1c3   : > { %v537_v19 = vpop.permute.xlu0 %536 }
 0x1c4   : > { %1004 = vmatmul.mubr.msk.bf16.vlgmr.msra.gmra.mrb[0].mxu1 %vm310_vm2, %v305_v9 }
 0x1c5   : > { %1014 = vmatpush3.bf16.xpose.msra.mxu1 %v428_v15  ;;  %1015 = vmatprep.mubr.msk.bf16.mxu1 %vm1326_vm0, %v1325_v0  ;;  %v655_v18 = vpop.permute.xlu1 %654 }
 0x1c6   : > { %1025 = vmatprep.subr.bf16.mxu1 %v1325_v0  ;;  %v660_v20 = vsel %vm310_vm2, %v655_v18, 0 }
 0x1c7   : > { %v653_v21 = vpop.permute.xlu0 %652 }
 0x1cc   : > { %1016 = vmatmul.mubr.msk.bf16.vlgmr.msra.gmra.mrb[4].mxu1 %vm310_vm2, %v421_v14 }
 0x1cd   : > { %1026 = vmatpush3.bf16.xpose.msra.mxu1 %v544_v17  ;;  %1027 = vmatprep.mubr.msk.bf16.mxu1 %vm1326_vm0, %v1325_v0 }
 0x1ce   : > { %1037 = vmatprep.subr.bf16.mxu1 %v1325_v0 }
 0x1d4   : > { %1028 = vmatmul.mubr.msk.bf16.vlgmr.msra.gmra.mrb[8].mxu1 %vm310_vm2, %v537_v19 }
 0x1d5   : > { %1038 = vmatpush3.bf16.xpose.msra.mxu1 %v660_v20  ;;  %1039 = vmatprep.mubr.msk.bf16.mxu1 %vm1326_vm0, %v1325_v0 }
 0x1d6   : > { %1049 = vmatprep.subr.bf16.mxu1 %v1325_v0 }
 0x1dc   : > { %1040 = vmatmul.mubr.msk.bf16.vlgmr.msra.gmra.mrb[12].mxu1 %vm310_vm2, %v653_v21 }
 0x1dd   : > { %1053 = vmatprep.mubr.msk.bf16.mxu1 %vm1326_vm0, %v1325_v0 }
 0x297   : > { %v351_v22 = vpop.f32.mrb[0].mxu1 }
 0x298   : > { %v1005_v23 = vpop.f32.mrb[1].mxu1  ;;  %v357_v24 = vsel %vm310_vm2, %v351_v22, -inf }
 0x299   : > { %358 = vmax.xlane.f32.xlu1 %v357_v24  ;;  %v354_v25 = vpop.f32.mrb[2].mxu1 }
 0x29a   : > { %v1006_v26 = vpop.f32.mrb[3].mxu1 }
 0x29f   : > { %v464_v27 = vpop.f32.mrb[4].mxu1 }
 0x2a0   : > { %v1017_v28 = vpop.f32.mrb[5].mxu1  ;;  %v470_v29 = vsel %vm310_vm2, %v464_v27, -inf }
 0x2a1   : > { %471 = vmax.xlane.f32.xlu0 %v470_v29  ;;  %v467_v30 = vpop.f32.mrb[6].mxu1 }
 0x2a2   : > { %v1018_v31 = vpop.f32.mrb[7].mxu1 }
 0x2a3   : > { %v1144_v31 = vld [vmem:[#allocation8] sm:$0xff]  }
 0x2a4   : > { %1050 = vmatpush3.bf16.msra.mxu1 %v1144_v31 }
 0x2a5   : > { %1051 = vmatprep.subr.bf16.mxu1 %v1325_v0 }
 0x2a7   : > { %v580_v32 = vpop.f32.mrb[8].mxu1 }
 0x2a8   : > { %v1029_v33 = vpop.f32.mrb[9].mxu1  ;;  %v586_v34 = vsel %vm310_vm2, %v580_v32, -inf }
 0x2a9   : > { %587 = vmax.xlane.f32.xlu0 %v586_v34  ;;  %v583_v35 = vpop.f32.mrb[10].mxu1 }
 0x2aa   : > { %v1030_v36 = vpop.f32.mrb[11].mxu1 }
 0x2af   : > { %v696_v37 = vpop.f32.mrb[12].mxu1 }
 0x2b0   : > { %v1041_v38 = vpop.f32.mrb[13].mxu1  ;;  %v702_v39 = vsel %vm310_vm2, %v696_v37, -inf }
 0x2b1   : > { %703 = vmax.xlane.f32.xlu1 %v702_v39  ;;  %v699_v40 = vpop.f32.mrb[14].mxu1 }
 0x2b2   : > { %v1042_v41 = vpop.f32.mrb[15].mxu1 }
 0x326   : > { %v359_v42 = vpop.xlane.xlu1 %358 }
 0x327   : > { %v360_v43 = vsub.f32 %v351_v22, %v359_v42 }
 0x329   : > { %v361_v44 = vmul.f32 1.442695, %v360_v43 }
 0x32b   : > { %1146 = vpow2.f32 %v361_v44 }
 0x32e   : > { %v472_v45 = vpop.xlane.xlu0 %471 }
 0x32f   : > { %v473_v46 = vsub.f32 %v464_v27, %v472_v45  ;;  %v963_v45 = vld [vmem:[%s1673_s3] ss:$0 sm:$0xff] }
 0x331   : > { %v474_v47 = vmul.f32 1.442695, %v473_v46 }
 0x333   : > { %1148 = vpow2.f32 %v474_v47 }
 0x335   : > { %v1147_v48 = vpop.eup %1146 }
 0x336   : > { %v588_v49 = vpop.xlane.xlu0 %587  ;;  %v363_v50 = vsel %vm310_vm2, %v1147_v48, 0.0 }
 0x337   : > { %v589_v51 = vsub.f32 %v580_v32, %v588_v49  ;;  %364 = vadd.xlane.f32.xlu0 %v363_v50  ;;  %v1145_v32 = vld [vmem:[#allocation8 + $0x8] sm:$0xff]  }
 0x338   : > { %1052 = vmatpush3.bf16.msra.mxu1 %v1145_v32 }
 0x339   : > { %v590_v52 = vmul.f32 1.442695, %v589_v51 }
 0x33b   : > { %1150 = vpow2.f32 %v590_v52 }
 0x33d   : > { %v1149_v53 = vpop.eup %1148 }
 0x33e   : > { %v476_v54 = vsel %vm310_vm2, %v1149_v53, 0.0  ;;  %v704_v57 = vpop.xlane.xlu1 %703 }
 0x33f   : > { %477 = vadd.xlane.f32.xlu1 %v476_v54  ;;  %v705_v58 = vsub.f32 %v696_v37, %v704_v57 }
 0x341   : > { %v706_v59 = vmul.f32 1.442695, %v705_v58 }
 0x343   : > { %1152 = vpow2.f32 %v706_v59 }
 0x345   : > { %v1151_v55 = vpop.eup %1150 }
 0x346   : > { %v592_v56 = vsel %vm310_vm2, %v1151_v55, 0.0 }
 0x347   : > { %593 = vadd.xlane.f32.xlu0 %v592_v56 }
 0x34d   : > { %v1153_v60 = vpop.eup %1152 }
 0x34e   : > { %v708_v61 = vsel %vm310_vm2, %v1153_v60, 0.0 }
 0x350   : > { %482 = vrot.lane.b32.xlu1 %v1559_v6, %s1334_s10  ;;  %s1248_s10 = scalar_lea.vmem %s1627_s30, 128 }
 0x351   : > { %p1249_p8 = scmp.ne.s32.totalorder %s1627_s30, %s1248_s10 }
 0x353   : > { %p1250_p1 = pnand %p1249_p8, %p1688_p0 }
 0x355   : > { %p1251_p3 = pneg %p1250_p1 }
 0x35d   : > { %369 = vrot.lane.b32.xlu0 %v1559_v6, %s1335_s24  ;;  %s1341_s24 = smov [#allocation9]  }
 0x361   : > { %714 = vrot.lane.b32.xlu0 %v1559_v6, %s1336_s20  ;;  %s1252_s20 = sshll.u32 %s1341_s24, 4  ;;  %s1253_s20 = int_to_ptr.vmem [resolvable:$false] %s1252_s20 }
 0x362   : > { %p1255_p7 = scmp.lt.s32.totalorder %s1627_s30, %s1253_s20 }
 0x374   : > { %709 = vadd.xlane.f32.xlu1 %v708_v61 }
 0x385   : > { %598 = vrot.lane.b32.xlu1 %v1559_v6, %s1337_s28  ;;  %s1254_s28 = scalar_lea.vmem %s1253_s20, 256 }
 0x386   : > { %p1256_p9 = scmp.lt.s32.totalorder %s1254_s28, %s1248_s10 }
 0x388   : > { %p1257_p12 = por %p1256_p9, %p1255_p7 }
 0x38a   : > { %p1258_p2 = pnand %p1257_p12, %p1251_p3 }
 0x3c4   : > { %v365_v62 = vpop.xlane.xlu0 %364 }
 0x3c5   : > { %1154 = vrcp.f32 %v365_v62 }
 0x3cc   : > { %v478_v63 = vpop.xlane.xlu1 %477 }
 0x3cd   : > { %1156 = vrcp.f32 %v478_v63 }
 0x3cf   : > { %v1155_v1 = vpop.eup %1154 }
 0x3d0   : > { %v367_v3 = vmul.f32 %v1155_v1, %v1147_v48  ;;  %v483_v7 = vpop.permute.xlu1 %482 }
 0x3d1   : > { %v488_v10 = vsel %vm374_vm3, %v483_v7, 0 }
 0x3d2   : > { %v368_v8 = vpack.c.bf16 %v367_v3, %v367_v3 }
 0x3d4   : > { %v594_v2 = vpop.xlane.xlu0 %593 }
 0x3d5   : > { %1158 = vrcp.f32 %v594_v2 }
 0x3d7   : > { %v1157_v9 = vpop.eup %1156 }
 0x3d8   : > { %v370_v4 = vpop.permute.xlu0 %369  ;;  %v480_v6 = vmul.f32 %v1157_v9, %v1149_v53 }
 0x3d9   : > { %v376_v5 = vsel %vm374_vm3, %v370_v4, 0 }
 0x3da   : > { %1008 = vmatpush3.bf16.msra.mxu0 %v376_v5  ;;  %v481_v11 = vpack.c.bf16 %v480_v6, %v480_v6 }
 0x3db   : > { %1019 = vmatprep.subr.bf16.mxu0 %v1325_v0 }
 0x3dc   : > { %v715_v17 = vpop.permute.xlu0 %714 }
 0x3dd   : > { %1010 = vmatmul.mubr.msk.bf16.vlgmr.msra.gmra.mrb[4].mxu0 %vm310_vm2, %v368_v8  ;;  %v720_v19 = vsel %vm374_vm3, %v715_v17, 0 }
 0x3de   : > { %1020 = vmatpush3.bf16.msra.mxu0 %v488_v10  ;;  %1021 = vmatprep.mubr.msk.bf16.mxu0 %vm1326_vm0, %v1325_v0 }
 0x3df   : > { %1031 = vmatprep.subr.bf16.mxu0 %v1325_v0  ;;  %v1159_v12 = vpop.eup %1158 }
 0x3e0   : > { %v596_v14 = vmul.f32 %v1159_v12, %v1151_v55 }
 0x3e2   : > { %v597_v18 = vpack.c.bf16 %v596_v14, %v596_v14 }
 0x3e5   : > { %1022 = vmatmul.mubr.msk.bf16.vlgmr.msra.gmra.mrb[8].mxu0 %vm310_vm2, %v481_v11 }
 0x3e6   : > { %1033 = vmatprep.mubr.msk.bf16.mxu0 %vm1326_vm0, %v1325_v0 }
 0x401   : > { %v710_v13 = vpop.xlane.xlu1 %709 }
 0x402   : > { %1160 = vrcp.f32 %v710_v13 }
 0x405   : > { %v599_v15 = vpop.permute.xlu1 %598 }
 0x406   : > { %v604_v16 = vsel %vm374_vm3, %v599_v15, 0 }
 0x407   : > { %1032 = vmatpush3.bf16.msra.mxu0 %v604_v16 }
 0x408   : > { %1043 = vmatprep.subr.bf16.mxu0 %v1325_v0 }
 0x40a   : > { %1034 = vmatmul.mubr.msk.bf16.vlgmr.msra.gmra.mrb[12].mxu0 %vm310_vm2, %v597_v18 }
 0x40b   : > { %1044 = vmatpush3.bf16.msra.mxu0 %v720_v19  ;;  %1045 = vmatprep.mubr.msk.bf16.mxu0 %vm1326_vm0, %v1325_v0 }
 0x40c   : > { %v1161_v20 = vpop.eup %1160 }
 0x40d   : > { %v712_v21 = vmul.f32 %v1161_v20, %v1153_v60 }
 0x40f   : > { %v713_v22 = vpack.c.bf16 %v712_v21, %v712_v21 }
 0x412   : > { %1046 = vmatmul.mubr.msk.bf16.vlgmr.msra.gmra.mrb[16].mxu0 %vm310_vm2, %v713_v22 }
 0x4b0   : > { %v412_v23 = vpop.f32.mrb[4].mxu0 }
 0x4b1   : > { %418 = vst.msk [vmem:[#allocation2] sm:$0xff] %vm310_vm2, %v412_v23  ;;  %v1011_v24 = vpop.f32.mrb[5].mxu0 }
 0x4b2   : > { %v415_v25 = vpop.f32.mrb[6].mxu0 }
 0x4b3   : > { %v1012_v26 = vpop.f32.mrb[7].mxu0 }
 0x4b8   : > { %v524_v27 = vpop.f32.mrb[8].mxu0 }
 0x4b9   : > { %531 = vrot.lane.b32.xlu1 %v524_v27, %s1338_s11  ;;  %v1023_v28 = vpop.f32.mrb[9].mxu0 }
 0x4ba   : > { %v527_v29 = vpop.f32.mrb[10].mxu0 }
 0x4bb   : > { %v1024_v30 = vpop.f32.mrb[11].mxu0 }
 0x4dd   : > { %v640_v33 = vpop.f32.mrb[12].mxu0 }
 0x4de   : > { %647 = vrot.lane.b32.xlu0 %v640_v33, %s1339_s12  ;;  %v1035_v34 = vpop.f32.mrb[13].mxu0 }
 0x4df   : > { %v643_v35 = vpop.f32.mrb[14].mxu0 }
 0x4e0   : > { %v1036_v36 = vpop.f32.mrb[15].mxu0 }
 0x4e5   : > { %v756_v37 = vpop.f32.mrb[16].mxu0 }
 0x4e6   : > { %763 = vrot.lane.b32.xlu1 %v756_v37, %s1340_s25  ;;  %v1047_v38 = vpop.f32.mrb[17].mxu0 }
 0x4e7   : > { %v759_v39 = vpop.f32.mrb[18].mxu0 }
 0x4e8   : > { %v1048_v40 = vpop.f32.mrb[19].mxu0 }
 0x52b   : > { %v532_v41 = vpop.permute.xlu1 %531 }
 0x52c   : > { %535 = vst.msk [vmem:[#allocation2] sm:$0xff] %vm534_vm4, %v532_v41 }
 0x550   : > { %v648_v0 = vpop.permute.xlu0 %647 }
 0x551   : > { %651 = vst.msk [vmem:[#allocation2] sm:$0xff] %vm650_vm5, %v648_v0 }
 0x558   : > { %v764_v42 = vpop.permute.xlu1 %763 }
 0x559   : > { %767 = vst.msk [vmem:[#allocation2] sm:$0xff] %vm766_vm6, %v764_v42 }
 0x560   : > { %v768_v43 = vld [vmem:[#allocation2] sm:$0xff] }
 0x561   : > { %v769_v44 = vpack.c.bf16 %v768_v43, %v768_v43 }
 0x563   : > { %1054 = vmatmul.mubr.msk.bf16.vlgmr.msra.gmra.mrb[16].mxu1 %vm260_vm1, %v769_v44 }
 0x636   : > { %v830_v46 = vpop.f32.mrb[16].mxu1 }
 0x637   : > { %v831_v47 = vadd.f32 %v963_v45, %v830_v46  ;;  %v1055_v48 = vpop.f32.mrb[17].mxu1 }
 0x638   : > { %v833_v49 = vpop.f32.mrb[18].mxu1 }
 0x639   : > { %v1056_v50 = vpop.f32.mrb[19].mxu1  ;;  %836 = vst.msk [vmem:[%s241_s27] sm:$0xff] %vm260_vm1, %v831_v47 }
 0x63a   : > { %1261 = shalt.err (!%p1258_p2)
}
 0x63b   : > { %s1262_s29 = scalar_lea.hbm %s1625_s26, 128  ;;  %s1266_s25 = scalar_lea.hbm %s1674_s4, 256 }
 0x63c   : > { %p1263_p13 = scmp.ne.s32.totalorder %s1625_s26, %s1262_s29  ;;  %p1267_p4 = scmp.lt.u32.totalorder %s1625_s26, %s1674_s4 }
 0x63d   : > { %p1268_p5 = scmp.lt.u32.totalorder %s1266_s25, %s1262_s29  ;;  %p1270_p8 = scmp.lt.u32.totalorder %s1262_s29, %s1625_s26 }
 0x63e   : > { %p1264_p6 = pnand %p1263_p13, %p1688_p0 }
 0x63f   : > { %p1269_p11 = por %p1268_p5, %p1267_p4 }
 0x640   : > { %p1265_p10 = pneg %p1264_p6 }
 0x641   : > { %p1271_p1 = por %p1270_p8, %p1269_p11 }
 0x643   : > { %p1272_p3 = pnand %p1271_p1, %p1265_p10 }
 0x645   : > { %1275 = shalt.err (!%p1272_p3)
}
 0x646   : > { %1067 = dma.vmem_to_hbm [thread:$0]  (%p1688_p0), %s1627_s30, 128, %s1625_s26, %s838_s19  }
 0x647 PF: > { %s863_s21 = sand.u32 1, %s1306_s15   ;;  %p1689_p7 = scmp.ne.s32.totalorder %s1679_s22, 0 }
 0x648   : > { %p1690_p9 = scmp.ge.s32.totalorder %s1318_s18, 2  ;;  %s864_s23 = scalar_lea.sflag [#allocation5], %s863_s21 }
 0x64a   : > { %p1081_p12 = pnand %p1690_p9, %p1689_p7 }
 0x64c   : > { %1301 = dma.done.wait (!%p1081_p12), %s864_s23, 128  }
 0x64d   : > { %1303 = vsyncadd (!%p1081_p12), %s864_s23, 4294967168  ;;  %p18_p2 = scmp.ge.s32.totalorder %s1477_s9, 4   ;;  %s1691_s15 = smov %s1310_s16 }
 0x64e   : > { %s1692_s16 = smov %s1314_s17  ;;  %s1693_s17 = smov %s1493_s14 }
 0x64f   : > { %s1694_s18 = smov %s1477_s9  ;;  %20 = sbr.rel (!%p18_p2) target bundleno = 6 (0x6), region = 89 }
 0x656   :  { %869 = vsyncpa [#allocation4], 1 }
 0x657   :  { %871 = vsyncpa [#allocation4 + $0x1], 1 }
 0x658   :  { %872 = vsyncpa [#allocation7], 1 }
 0x659   :  { %873 = vsyncpa [#allocation5], 1 }
 0x65a   :  { %875 = vsyncpa [#allocation5 + $0x1], 1 }

</bundles_post_ra>
